<compile_context>
chip_gen: v7x
topology: tpu7x:2x2x1
jax: 0.10.0
libtpu: 0.0.40
codegen_flags: <defaults>
</compile_context>

<pallas_src>
import jax
import jax.numpy as jnp
from jax.experimental import pallas as pl
from jax.experimental.pallas import tpu as pltpu


def _round_up(n, m):
    return ((n + m - 1) // m) * m


def _value_mlp_kernel(x_ref, w1_ref, b1_ref, w2_ref, b2_ref, w3_ref, b3_ref,
                      o_ref):
    # x tile: (TB, D) bf16. Weights bf16 (resident), biases f32.
    x = x_ref[...]
    # trans: Linear(D->H) + ReLU    (MXU matmul, f32 accumulation)
    h1 = jnp.dot(x, w1_ref[...], preferred_element_type=jnp.float32)
    h1 = jnp.maximum(h1 + b1_ref[...], 0.0)                 # VPU, f32
    # value_net hidden: Linear(H->H) + ReLU
    h2 = jnp.dot(h1.astype(jnp.bfloat16), w2_ref[...],
                 preferred_element_type=jnp.float32)
    h2 = jnp.maximum(h2 + b2_ref[...], 0.0)                 # VPU, f32
    # value head (N=1): VPU multiply + XLU lane-reduce instead of an MXU
    # matmul with a single output column.
    w3_row = w3_ref[...].astype(jnp.float32)                # (1, H)
    v = jnp.sum(h2 * w3_row, axis=-1, keepdims=True)        # (TB, 1)
    o_ref[...] = (v + b3_ref[0, 0]).astype(o_ref.dtype)


def batched_value_wrapper(observation, params, tb=256):
    """Forward pass of BatchedValueWrapper.

    observation: (C, H, W) or (B, C, H, W) float array (NCHW, PyTorch layout).
    params: dict with
        w1 (D, H)  bf16, b1 (1, H) f32,
        w2 (H, H)  bf16, b2 (1, H) f32,
        w3 (1, H)  bf16 (value-head row), b3 (1, 1) f32.
    Returns (B, 1) float32 values.
    """
    if observation.ndim == 3:
        observation = observation[None, ...]                # unsqueeze(0)
    B = observation.shape[0]
    x = observation.reshape(B, -1).astype(jnp.bfloat16)     # flatten(start_dim=1)
    D = x.shape[1]

    w1, b1 = params["w1"], params["b1"]
    w2, b2 = params["w2"], params["b2"]
    w3, b3 = params["w3"], params["b3"]
    H = w1.shape[1]

    # Batch tiling: TB is a multiple of 8 (sublane), 256 for large batches
    # (maps cleanly onto the 128/256-wide MXU on all generations and fits
    # comfortably in VMEM: bf16 x tile is TB*D*2 bytes, double-buffered).
    TB = tb if B > tb else _round_up(max(B, 1), 8)
    Bp = _round_up(B, TB)
    if Bp != B:
        x = jnp.pad(x, ((0, Bp - B), (0, 0)))
    grid = (Bp // TB,)

    flops = 2 * Bp * (D * H + H * H + H)
    bytes_accessed = (Bp * D * 2            # x (bf16)
                      + (D * H + H * H + H) * 2   # weights (bf16)
                      + 2 * H * 4 + 4       # biases (f32)
                      + Bp * 4)             # output (f32)

    out = pl.pallas_call(
        _value_mlp_kernel,
        out_shape=jax.ShapeDtypeStruct((Bp, 1), jnp.float32),
        grid=grid,
        in_specs=[
            pl.BlockSpec((TB, D), lambda i: (i, 0)),        # x: moves with grid
            pl.BlockSpec((D, H), lambda i: (0, 0)),         # w1: resident
            pl.BlockSpec((1, H), lambda i: (0, 0)),         # b1: resident
            pl.BlockSpec((H, H), lambda i: (0, 0)),         # w2: resident
            pl.BlockSpec((1, H), lambda i: (0, 0)),         # b2: resident
            pl.BlockSpec((1, H), lambda i: (0, 0)),         # w3 row: resident
            pl.BlockSpec(memory_space=pltpu.MemorySpace.SMEM),  # b3 scalar
        ],
        out_specs=pl.BlockSpec((TB, 1), lambda i: (i, 0)),
        compiler_params=pltpu.CompilerParams(
            dimension_semantics=("parallel",)),
        cost_estimate=pl.CostEstimate(
            flops=flops, transcendentals=0, bytes_accessed=bytes_accessed),
    )(x, w1, b1, w2, b2, w3, b3)

    return out[:B]


def init_params(key, in_dim, hidden):
    k1, k2, k3 = jax.random.split(key, 3)
    scale1 = 1.0 / jnp.sqrt(in_dim)
    scale2 = 1.0 / jnp.sqrt(hidden)
    return {
        "w1": (jax.random.normal(k1, (in_dim, hidden), jnp.float32)
               * scale1).astype(jnp.bfloat16),
        "b1": jnp.zeros((1, hidden), jnp.float32),
        "w2": (jax.random.normal(k2, (hidden, hidden), jnp.float32)
               * scale2).astype(jnp.bfloat16),
        "b2": jnp.zeros((1, hidden), jnp.float32),
        "w3": (jax.random.normal(k3, (1, hidden), jnp.float32)
               * scale2).astype(jnp.bfloat16),
        "b3": jnp.zeros((1, 1), jnp.float32),
    }


def _reference(observation, params):
    # Pure-JAX reference with the same bf16 operand / f32 accumulation recipe.
    if observation.ndim == 3:
        observation = observation[None, ...]
    x = observation.reshape(observation.shape[0], -1).astype(jnp.bfloat16)
    h1 = jnp.dot(x, params["w1"], preferred_element_type=jnp.float32)
    h1 = jnp.maximum(h1 + params["b1"], 0.0)
    h2 = jnp.dot(h1.astype(jnp.bfloat16), params["w2"],
                 preferred_element_type=jnp.float32)
    h2 = jnp.maximum(h2 + params["b2"], 0.0)
    v = jnp.sum(h2 * params["w3"].astype(jnp.float32), axis=-1, keepdims=True)
    return v + params["b3"][0, 0]


if __name__ == "__main__":
    key = jax.random.PRNGKey(0)
    k_obs, k_par = jax.random.split(key)

    B, C, H, W = 2, 4, 16, 16          # small NCHW observation
    hidden = 128
    in_dim = C * H * W                 # 1024

    observation = jax.random.normal(k_obs, (B, C, H, W), jnp.float32)
    params = init_params(k_par, in_dim, hidden)

    out = jax.block_until_ready(batched_value_wrapper(observation, params))
    ref = _reference(observation, params)
    assert out.shape == (B, 1)
    assert jnp.allclose(out, ref, atol=2e-2, rtol=2e-2), (out, ref)

    # 3-D (single observation) path: unsqueeze(0) behaviour.
    out_single = jax.block_until_ready(
        batched_value_wrapper(observation[0], params))
    ref_single = _reference(observation[0], params)
    assert out_single.shape == (1, 1)
    assert jnp.allclose(out_single, ref_single, atol=2e-2, rtol=2e-2)

    # Non-multiple-of-tile batch to exercise padding + grid.
    obs_big = jax.random.normal(k_obs, (20, C, H, W), jnp.float32)
    out_big = jax.block_until_ready(batched_value_wrapper(obs_big, params))
    ref_big = _reference(obs_big, params)
    assert out_big.shape == (20, 1)
    assert jnp.allclose(out_big, ref_big, atol=2e-2, rtol=2e-2)

    print("KERNEL_OK")
</pallas_src>

<mosaic_0001>
module attributes {stable_mosaic.version = 11 : i64} {
  func.func @_value_mlp_kernel(%arg0: i32, %arg1: memref<8x1024xbf16, #tpu.memory_space<vmem>>, %arg2: memref<1024x128xbf16, #tpu.memory_space<vmem>>, %arg3: memref<1x128xf32, #tpu.memory_space<vmem>>, %arg4: memref<128x128xbf16, #tpu.memory_space<vmem>>, %arg5: memref<1x128xf32, #tpu.memory_space<vmem>>, %arg6: memref<1x128xbf16, #tpu.memory_space<vmem>>, %arg7: memref<1x1xf32, #tpu.memory_space<smem>>, %arg8: memref<8x1xf32, #tpu.memory_space<vmem>>) attributes {dimension_semantics = [#tpu.dimension_semantics<parallel>], iteration_bounds = array<i64: 1>, scalar_prefetch = 0 : i64, scratch_operands = 0 : i64, tpu.core_type = #tpu.core_type<tc>, window_params = [{transform_indices = @transform_0, window_bounds = array<i64: 8, 1024>}, {pipeline_mode = #tpu.pipeline_mode<synchronous>, transform_indices = @transform_1, window_bounds = array<i64: 1024, 128>}, {pipeline_mode = #tpu.pipeline_mode<synchronous>, transform_indices = @transform_2, window_bounds = array<i64: 1, 128>}, {pipeline_mode = #tpu.pipeline_mode<synchronous>, transform_indices = @transform_3, window_bounds = array<i64: 128, 128>}, {pipeline_mode = #tpu.pipeline_mode<synchronous>, transform_indices = @transform_4, window_bounds = array<i64: 1, 128>}, {pipeline_mode = #tpu.pipeline_mode<synchronous>, transform_indices = @transform_5, window_bounds = array<i64: 1, 128>}, {transform_indices = @transform_6, window_bounds = array<i64: 1, 1>}, {transform_indices = @transform_7, window_bounds = array<i64: 8, 1>}]} {
    %c0 = arith.constant 0 : index
    %c0_0 = arith.constant 0 : index
    %0 = vector.load %arg1[%c0, %c0_0] : memref<8x1024xbf16, #tpu.memory_space<vmem>>, vector<8x1024xbf16>
    %c0_1 = arith.constant 0 : index
    %c0_2 = arith.constant 0 : index
    %1 = vector.load %arg2[%c0_1, %c0_2] : memref<1024x128xbf16, #tpu.memory_space<vmem>>, vector<1024x128xbf16>
    %cst = arith.constant dense<0.000000e+00> : vector<8x128xf32>
    %2 = tpu.matmul %0, %1, %cst {dimension_numbers = #tpu.dot_dimension_numbers<[1], [0], [0], [1], [0, 0, 1, 1], [], []>} : vector<8x1024xbf16>, vector<1024x128xbf16>, vector<8x128xf32> -> vector<8x128xf32>
    %c0_3 = arith.constant 0 : index
    %c0_4 = arith.constant 0 : index
    %3 = vector.load %arg3[%c0_3, %c0_4] : memref<1x128xf32, #tpu.memory_space<vmem>>, vector<1x128xf32>
    %4 = vector.broadcast %3 : vector<1x128xf32> to vector<8x128xf32>
    %5 = arith.addf %2, %4 : vector<8x128xf32>
    %cst_5 = arith.constant 0.000000e+00 : f32
    %6 = vector.broadcast %cst_5 : f32 to vector<8x128xf32>
    %7 = arith.maximumf %5, %6 : vector<8x128xf32>
    %8 = arith.truncf %7 : vector<8x128xf32> to vector<8x128xbf16>
    %c0_6 = arith.constant 0 : index
    %c0_7 = arith.constant 0 : index
    %9 = vector.load %arg4[%c0_6, %c0_7] : memref<128x128xbf16, #tpu.memory_space<vmem>>, vector<128x128xbf16>
    %cst_8 = arith.constant dense<0.000000e+00> : vector<8x128xf32>
    %10 = tpu.matmul %8, %9, %cst_8 {dimension_numbers = #tpu.dot_dimension_numbers<[1], [0], [0], [1], [0, 0, 1, 1], [], []>} : vector<8x128xbf16>, vector<128x128xbf16>, vector<8x128xf32> -> vector<8x128xf32>
    %c0_9 = arith.constant 0 : index
    %c0_10 = arith.constant 0 : index
    %11 = vector.load %arg5[%c0_9, %c0_10] : memref<1x128xf32, #tpu.memory_space<vmem>>, vector<1x128xf32>
    %12 = vector.broadcast %11 : vector<1x128xf32> to vector<8x128xf32>
    %13 = arith.addf %10, %12 : vector<8x128xf32>
    %cst_11 = arith.constant 0.000000e+00 : f32
    %14 = vector.broadcast %cst_11 : f32 to vector<8x128xf32>
    %15 = arith.maximumf %13, %14 : vector<8x128xf32>
    %c0_12 = arith.constant 0 : index
    %c0_13 = arith.constant 0 : index
    %16 = vector.load %arg6[%c0_12, %c0_13] : memref<1x128xbf16, #tpu.memory_space<vmem>>, vector<1x128xbf16>
    %17 = arith.extf %16 : vector<1x128xbf16> to vector<1x128xf32>
    %18 = vector.broadcast %17 : vector<1x128xf32> to vector<8x128xf32>
    %19 = arith.mulf %15, %18 : vector<8x128xf32>
    %cst_14 = arith.constant dense<0.000000e+00> : vector<8xf32>
    %20 = vector.multi_reduction <add>, %19, %cst_14 [1] : vector<8x128xf32> to vector<8xf32>
    %21 = vector.shape_cast %20 : vector<8xf32> to vector<8x1xf32>
    %c0_15 = arith.constant 0 : index
    %c0_16 = arith.constant 0 : index
    %22 = memref.load %arg7[%c0_15, %c0_16] : memref<1x1xf32, #tpu.memory_space<smem>>
    %23 = vector.broadcast %22 : f32 to vector<8x1xf32>
    %24 = arith.addf %21, %23 : vector<8x1xf32>
    %c0_17 = arith.constant 0 : index
    %c0_18 = arith.constant 0 : index
    %25 = vector.load %arg8[%c0_17, %c0_18] : memref<8x1xf32, #tpu.memory_space<vmem>>, vector<8x1xf32>
    tpu.vector_store %arg8[%c0_17, %c0_18], %24 {strides = array<i32>} : memref<8x1xf32, #tpu.memory_space<vmem>>, vector<8x1xf32>,
    return
  }
  func.func @transform_0(%arg0: i32) -> (i32, i32) {
    %c0_i32 = arith.constant 0 : i32
    %c0_i32_0 = arith.constant 0 : i32
    return %arg0, %c0_i32 : i32, i32
  }
  func.func @transform_1(%arg0: i32) -> (i32, i32) {
    %c0_i32 = arith.constant 0 : i32
    %c0_i32_0 = arith.constant 0 : i32
    %c0_i32_1 = arith.constant 0 : i32
    return %c0_i32, %c0_i32_0 : i32, i32
  }
  func.func @transform_2(%arg0: i32) -> (i32, i32) {
    %c0_i32 = arith.constant 0 : i32
    %c0_i32_0 = arith.constant 0 : i32
    %c0_i32_1 = arith.constant 0 : i32
    return %c0_i32, %c0_i32_0 : i32, i32
  }
  func.func @transform_3(%arg0: i32) -> (i32, i32) {
    %c0_i32 = arith.constant 0 : i32
    %c0_i32_0 = arith.constant 0 : i32
    %c0_i32_1 = arith.constant 0 : i32
    return %c0_i32, %c0_i32_0 : i32, i32
  }
  func.func @transform_4(%arg0: i32) -> (i32, i32) {
    %c0_i32 = arith.constant 0 : i32
    %c0_i32_0 = arith.constant 0 : i32
    %c0_i32_1 = arith.constant 0 : i32
    return %c0_i32, %c0_i32_0 : i32, i32
  }
  func.func @transform_5(%arg0: i32) -> (i32, i32) {
    %c0_i32 = arith.constant 0 : i32
    %c0_i32_0 = arith.constant 0 : i32
    %c0_i32_1 = arith.constant 0 : i32
    return %c0_i32, %c0_i32_0 : i32, i32
  }
  func.func @transform_6(%arg0: i32) -> (i32, i32) {
    %c0_i32 = arith.constant 0 : i32
    %c0_i32_0 = arith.constant 0 : i32
    %c0_i32_1 = arith.constant 0 : i32
    return %c0_i32, %c0_i32_0 : i32, i32
  }
  func.func @transform_7(%arg0: i32) -> (i32, i32) {
    %c0_i32 = arith.constant 0 : i32
    %c0_i32_0 = arith.constant 0 : i32
    return %arg0, %c0_i32 : i32, i32
  }
}

</mosaic_0001>

<bundles_post_ra>
// kernel: tpu_custom_call.1
= control target key start
LH: loop header
LB: loop body
LE: loop exit
PB: predicated region body
PF: predicated region fallthrough
CT: control target
= control target key end

     0   :  { %13 = vsyncpa [#allocation4], 0  ;;  %s1372_s0 = inlined_call_operand.hbm [shape: bf16[8,1024], index: 0, kind: input, shape index: {}]   ;;  %s1373_s1 = inlined_call_operand.hbm [shape: bf16[1024,128], index: 1, kind: input, shape index: {}]   ;;  %s1374_s2 = inlined_call_operand.vmem [shape: f32[1,128], index: 2, kind: input, shape index: {}]   ;;  %s1375_s3 = inlined_call_operand.hbm [shape: bf16[128,128], index: 3, kind: input, shape index: {}]   ;;  %s1376_s4 = inlined_call_operand.vmem [shape: f32[1,128], index: 4, kind: input, shape index: {}]   ;;  %s1377_s5 = inlined_call_operand.vmem [shape: bf16[1,128], index: 5, kind: input, shape index: {}]   ;;  %s1378_s6 = inlined_call_operand.<no memory space> [shape: f32[1,1], index: 6, kind: input, shape index: {}]   ;;  %s1379_s7 = inlined_call_operand.vmem [shape: f32[8,1], index: 7, kind: output, shape index: {}]  }
   0x1   :  { %14 = vsyncpa [#allocation6], 0  ;;  %s1268_s24 = smov [#allocation5]   ;;  %s1198_s28 = scalar_lea.hbm %s1373_s1, 8192 }
   0x2   :  { %s30_s25 = sshll.u32 %s1268_s24, 4  ;;  %p1199_p0 = scmp.ne.s32.totalorder %s1373_s1, %s1198_s28  ;;  %s31_s25 = int_to_ptr.vmem [resolvable:$true] %s30_s25 }
   0x3   :  { %p1202_p1 = scmp.lt.u32.totalorder %s1198_s28, %s1373_s1 }
   0x5   :  { %p1204_p2 = pnand %p1202_p1, %p1199_p0 }
   0x7   :  { %1207 = shalt.err (!%p1204_p2)
}
   0x8   :  { %s1208_s10 = scalar_lea.vmem %s31_s25, 8192  ;;  %p1213_p4 = scmp.lt.s32.totalorder %s31_s25, %s31_s25 }
   0x9   :  { %p1209_p3 = scmp.ne.s32.totalorder %s31_s25, %s1208_s10  ;;  %p1214_p5 = scmp.lt.s32.totalorder %s1208_s10, %s1208_s10 }
   0xb   :  { %p1215_p6 = por %p1214_p5, %p1213_p4 }
   0xd   :  { %p1216_p7 = pnand %p1215_p6, %p1209_p3 }
   0xf   :  { %1219 = shalt.err (!%p1216_p7)
}
  0x10   :  { %s1269_s11 = smov 64   ;;  %s1270_s12 = smov 4  }
  0x11   :  { %36 = dma.hbm_to_vmem [thread:$0]  %s1373_s1, 8192, %s31_s25, [#allocation6], %s1269_s11, %s1269_s11, %s1270_s12  }
  0x12   :  { %s1271_s15 = smov [#allocation3]   ;;  %s1272_s17 = smov [#allocation7]  }
  0x13   :  { %s21_s16 = sshll.u32 %s1271_s15, 4  ;;  %s44_s18 = sshll.u32 %s1272_s17, 4  ;;  %s22_s16 = int_to_ptr.vmem [resolvable:$true] %s21_s16  ;;  %s45_s18 = int_to_ptr.vmem [resolvable:$true] %s44_s18 }
  0x14   :  { %s1220_s21 = scalar_lea.hbm %s1372_s0, 512 }
  0x15   :  { %p1221_p8 = scmp.ne.s32.totalorder %s1372_s0, %s1220_s21  ;;  %p1224_p9 = scmp.lt.u32.totalorder %s1220_s21, %s1372_s0 }
  0x17   :  { %p1226_p10 = pnand %p1224_p9, %p1221_p8 }
  0x19   :  { %1229 = shalt.err (!%p1226_p10)
}
  0x1a   :  { %s1230_s1 = scalar_lea.vmem %s22_s16, 512  ;;  %p1235_p12 = scmp.lt.s32.totalorder %s22_s16, %s22_s16 }
  0x1b   :  { %p1231_p11 = scmp.ne.s32.totalorder %s22_s16, %s1230_s1  ;;  %p1236_p13 = scmp.lt.s32.totalorder %s1230_s1, %s1230_s1 }
  0x1d   :  { %p1237_p0 = por %p1236_p13, %p1235_p12 }
  0x1f   :  { %p1238_p1 = pnand %p1237_p0, %p1231_p11 }
  0x21   :  { %1241 = shalt.err (!%p1238_p1)
}
  0x22   :  { %24 = dma.hbm_to_vmem [thread:$0]  %s1372_s0, 512, %s22_s16, [#allocation4]  }
  0x23   :  { %s1242_s30 = scalar_lea.hbm %s1375_s3, 1024 }
  0x24   :  { %p1243_p2 = scmp.ne.s32.totalorder %s1375_s3, %s1242_s30  ;;  %p1246_p3 = scmp.lt.u32.totalorder %s1242_s30, %s1375_s3 }
  0x26   :  { %p1248_p4 = pnand %p1246_p3, %p1243_p2 }
  0x28   :  { %1251 = shalt.err (!%p1248_p4)
}
  0x29   :  { %s1252_s14 = scalar_lea.vmem %s45_s18, 1024  ;;  %p1257_p6 = scmp.lt.s32.totalorder %s45_s18, %s45_s18 }
  0x2a   :  { %p1253_p5 = scmp.ne.s32.totalorder %s45_s18, %s1252_s14  ;;  %p1258_p7 = scmp.lt.s32.totalorder %s1252_s14, %s1252_s14 }
  0x2c   :  { %p1259_p8 = por %p1258_p7, %p1257_p6 }
  0x2e   :  { %p1260_p9 = pnand %p1259_p8, %p1253_p5 }
  0x30   :  { %1263 = shalt.err (!%p1260_p9)
}
  0x31   :  { %50 = dma.hbm_to_vmem [thread:$0]  %s1375_s3, 1024, %s45_s18, [#allocation6], %s1269_s11, %s1269_s11, %s1270_s12  }
  0x32   :  { %1264 = dma.done.wait [#allocation4], 512  }
  0x33   :  { %1265 = vsyncadd [#allocation4], 4294966784 }
  0x34   :  { %1266 = dma.done.wait [#allocation6], 9216  }
  0x35   :  { %1267 = vsyncadd [#allocation6], 4294958080  ;;  %v1118_v0 = vld [vmem:[#allocation5 + $0x40] sm:$0xff]   ;;  %v1122_v4 = vld [vmem:[#allocation5 + $0x48] sm:$0xff]   ;;  %vm1274_vm0 = vmmov 0   ;;  %vm904_vm1 = vcmask 7168  }
  0x36   :  { %v1119_v1 = vld [vmem:[#allocation5 + $0xc0] sm:$0xff]   ;;  %994 = vmatprep.subr.bf16.mxu0 %v1118_v0  ;;  %v1123_v5 = vld [vmem:[#allocation5 + $0xc8] sm:$0xff]   ;;  %v1126_v8 = vld [vmem:[#allocation5 + $0x50] sm:$0xff]  }
  0x37   :  { %v1120_v2 = vld [vmem:[#allocation5] sm:$0xff]   ;;  %1016 = vmatprep.subr.bf16.mxu1 %v1119_v1  ;;  %v1124_v6 = vld [vmem:[#allocation5 + $0x8] sm:$0xff]   ;;  %v1127_v9 = vld [vmem:[#allocation5 + $0xd0] sm:$0xff]  }
  0x38   :  { %v1121_v3 = vld [vmem:[#allocation5 + $0x80] sm:$0xff]   ;;  %995 = vmatpush3.bf16.msra.mxu0 %v1120_v2  ;;  %v1125_v7 = vld [vmem:[#allocation5 + $0x88] sm:$0xff]   ;;  %v1128_v10 = vld [vmem:[#allocation5 + $0x10] sm:$0xff]  }
  0x39   :  { %1017 = vmatpush3.bf16.msra.mxu1 %v1121_v3  ;;  %996 = vmatprep.subr.bf16.mxu0 %v1122_v4  ;;  %v1129_v11 = vld [vmem:[#allocation5 + $0x90] sm:$0xff]   ;;  %v1130_v12 = vld [vmem:[#allocation5 + $0x58] sm:$0xff]   ;;  %v1134_v16 = vld [vmem:[#allocation5 + $0x60] sm:$0xff]  }
  0x3a   :  { %1018 = vmatprep.subr.bf16.mxu1 %v1123_v5  ;;  %v1131_v13 = vld [vmem:[#allocation5 + $0xd8] sm:$0xff]   ;;  %v1135_v17 = vld [vmem:[#allocation5 + $0xe0] sm:$0xff]   ;;  %v1138_v20 = vld [vmem:[#allocation5 + $0x68] sm:$0xff]  }
  0x3b   :  { %v1132_v14 = vld [vmem:[#allocation5 + $0x18] sm:$0xff]   ;;  %v1136_v18 = vld [vmem:[#allocation5 + $0x20] sm:$0xff]   ;;  %v1139_v21 = vld [vmem:[#allocation5 + $0xe8] sm:$0xff]  }
  0x3c   :  { %997 = vmatpush3.bf16.msra.mxu0 %v1124_v6  ;;  %v1133_v15 = vld [vmem:[#allocation5 + $0x98] sm:$0xff]   ;;  %v1137_v19 = vld [vmem:[#allocation5 + $0xa0] sm:$0xff]   ;;  %v1140_v22 = vld [vmem:[#allocation5 + $0x28] sm:$0xff]  }
  0x3d   :  { %1019 = vmatpush3.bf16.msra.mxu1 %v1125_v7  ;;  %998 = vmatprep.subr.bf16.mxu0 %v1126_v8  ;;  %v1141_v23 = vld [vmem:[#allocation5 + $0xa8] sm:$0xff]   ;;  %v1142_v24 = vld [vmem:[#allocation5 + $0x70] sm:$0xff]   ;;  %v1146_v28 = vld [vmem:[#allocation5 + $0x78] sm:$0xff]  }
  0x3e   :  { %1020 = vmatprep.subr.bf16.mxu1 %v1127_v9  ;;  %v1143_v25 = vld [vmem:[#allocation5 + $0xf0] sm:$0xff]   ;;  %v1147_v29 = vld [vmem:[#allocation5 + $0xf8] sm:$0xff]   ;;  %v67_v32 = vld [vmem:[#allocation3] sm:$0xff] }
  0x3f   :  { %v1144_v26 = vld [vmem:[#allocation5 + $0x30] sm:$0xff]   ;;  %v1148_v30 = vld [vmem:[#allocation5 + $0x38] sm:$0xff]   ;;  %v68_v33 = vld [vmem:[#allocation3 + $0x8] sm:$0xff]  ;;  %v913_v34 = vcombine.low %v67_v32, %v67_v32  ;;  %v914_v35 = vcombine.high %v67_v32, %v67_v32 }
  0x40   :  { %999 = vmatpush3.bf16.msra.mxu0 %v1128_v10  ;;  %v1145_v27 = vld [vmem:[#allocation5 + $0xb0] sm:$0xff]   ;;  %v1149_v31 = vld [vmem:[#allocation5 + $0xb8] sm:$0xff]   ;;  %v915_v36 = vcombine.low %v68_v33, %v68_v33  ;;  %v916_v37 = vcombine.high %v68_v33, %v68_v33  ;;  %v1154_v38 = vld [vmem:[#allocation5 + $0x140] sm:$0xff]  }
  0x41   :  { %1021 = vmatpush3.bf16.msra.mxu1 %v1129_v11  ;;  %1000 = vmatprep.subr.bf16.mxu0 %v1130_v12  ;;  %v1155_v39 = vld [vmem:[#allocation5 + $0x1c0] sm:$0xff]   ;;  %v1158_v42 = vld [vmem:[#allocation5 + $0x148] sm:$0xff]   ;;  %v1162_v46 = vld [vmem:[#allocation5 + $0x150] sm:$0xff]  }
  0x42   :  { %1022 = vmatprep.subr.bf16.mxu1 %v1131_v13  ;;  %650 = vmatprep.mubr.bf16.mxu0 %v914_v35  ;;  %v1156_v40 = vld [vmem:[#allocation5 + $0x100] sm:$0xff]   ;;  %v1159_v43 = vld [vmem:[#allocation5 + $0x1c8] sm:$0xff]   ;;  %v1163_v47 = vld [vmem:[#allocation5 + $0x1d0] sm:$0xff]   ;;  %v1273_v13 = vmov 0.0  }
  0x43   :  { %690 = vmatprep.mubr.bf16.mxu1 %v916_v37  ;;  %v1157_v41 = vld [vmem:[#allocation5 + $0x180] sm:$0xff]   ;;  %v1160_v44 = vld [vmem:[#allocation5 + $0x108] sm:$0xff]   ;;  %v1164_v48 = vld [vmem:[#allocation5 + $0x110] sm:$0xff]  }
  0x44   :  { %1001 = vmatpush3.bf16.msra.mxu0 %v1132_v14  ;;  %v1161_v45 = vld [vmem:[#allocation5 + $0x188] sm:$0xff]   ;;  %v1165_v49 = vld [vmem:[#allocation5 + $0x190] sm:$0xff]   ;;  %v1166_v50 = vld [vmem:[#allocation5 + $0x158] sm:$0xff]  }
  0x45   :  { %1023 = vmatpush3.bf16.msra.mxu1 %v1133_v15  ;;  %1002 = vmatprep.subr.bf16.mxu0 %v1134_v16  ;;  %v1167_v51 = vld [vmem:[#allocation5 + $0x1d8] sm:$0xff]   ;;  %v1170_v54 = vld [vmem:[#allocation5 + $0x160] sm:$0xff]   ;;  %v1174_v58 = vld [vmem:[#allocation5 + $0x168] sm:$0xff]  }
  0x46   :  { %1024 = vmatprep.subr.bf16.mxu1 %v1135_v17  ;;  %v1168_v52 = vld [vmem:[#allocation5 + $0x118] sm:$0xff]   ;;  %v1171_v55 = vld [vmem:[#allocation5 + $0x1e0] sm:$0xff]   ;;  %v1175_v59 = vld [vmem:[#allocation5 + $0x1e8] sm:$0xff]  }
  0x47   :  { %v1169_v53 = vld [vmem:[#allocation5 + $0x198] sm:$0xff]   ;;  %v1172_v56 = vld [vmem:[#allocation5 + $0x120] sm:$0xff]   ;;  %v1176_v60 = vld [vmem:[#allocation5 + $0x128] sm:$0xff]  }
  0x48   :  { %1003 = vmatpush3.bf16.msra.mxu0 %v1136_v18  ;;  %v1173_v57 = vld [vmem:[#allocation5 + $0x1a0] sm:$0xff]   ;;  %v1177_v61 = vld [vmem:[#allocation5 + $0x1a8] sm:$0xff]   ;;  %v1178_v62 = vld [vmem:[#allocation5 + $0x170] sm:$0xff]  }
  0x49   :  { %1025 = vmatpush3.bf16.msra.mxu1 %v1137_v19  ;;  %1004 = vmatprep.subr.bf16.mxu0 %v1138_v20  ;;  %v1179_v63 = vld [vmem:[#allocation5 + $0x1f0] sm:$0xff]   ;;  %v1182_v2 = vld [vmem:[#allocation5 + $0x178] sm:$0xff]   ;;  %v1190_v12 = vld [vmem:[#allocation7] sm:$0xff]  }
  0x4a   :  { %1026 = vmatprep.subr.bf16.mxu1 %v1139_v21  ;;  %v1180_v0 = vld [vmem:[#allocation5 + $0x130] sm:$0xff]   ;;  %v1183_v3 = vld [vmem:[#allocation5 + $0x1f8] sm:$0xff]   ;;  %v1191_v14 = vld [vmem:[#allocation7 + $0x8] sm:$0xff]  }
  0x4b   :  { %v1181_v1 = vld [vmem:[#allocation5 + $0x1b0] sm:$0xff]   ;;  %v1184_v4 = vld [vmem:[#allocation5 + $0x138] sm:$0xff]   ;;  %v1194_v17 = vld [vmem:[#allocation7 + $0x20] sm:$0xff]  }
  0x4c   :  { %1005 = vmatpush3.bf16.msra.mxu0 %v1140_v22  ;;  %v1185_v5 = vld [vmem:[#allocation5 + $0x1b8] sm:$0xff]   ;;  %v69_v6 = vld [vmem:[#allocation3 + $0x10] sm:$0xff]  ;;  %v1195_v18 = vld [vmem:[#allocation7 + $0x28] sm:$0xff]  }
  0x4d   :  { %1027 = vmatpush3.bf16.msra.mxu1 %v1141_v23  ;;  %1006 = vmatprep.subr.bf16.mxu0 %v1142_v24  ;;  %v917_v7 = vcombine.low %v69_v6, %v69_v6  ;;  %v918_v8 = vcombine.high %v69_v6, %v69_v6  ;;  %v70_v9 = vld [vmem:[#allocation3 + $0x18] sm:$0xff]  ;;  %v1192_v15 = vld [vmem:[#allocation7 + $0x10] sm:$0xff]   ;;  %v912_v23 = vld [vmem:[%s1374_s2] ss:$0 sm:$0xff] }
  0x4e   :  { %1028 = vmatprep.subr.bf16.mxu1 %v1143_v25  ;;  %v919_v10 = vcombine.low %v70_v9, %v70_v9  ;;  %v920_v11 = vcombine.high %v70_v9, %v70_v9  ;;  %v1193_v16 = vld [vmem:[#allocation7 + $0x18] sm:$0xff]   ;;  %v1196_v19 = vld [vmem:[#allocation7 + $0x30] sm:$0xff]  }
  0x4f   :  { %v1197_v20 = vld [vmem:[#allocation7 + $0x38] sm:$0xff]  }
  0x50   :  { %1007 = vmatpush3.bf16.msra.mxu0 %v1144_v26 }
  0x51   :  { %1029 = vmatpush3.bf16.msra.mxu1 %v1145_v27  ;;  %1008 = vmatprep.subr.bf16.mxu0 %v1146_v28 }
  0x52   :  { %1030 = vmatprep.subr.bf16.mxu1 %v1147_v29 }
  0x54   :  { %1009 = vmatpush3.bf16.msra.mxu0 %v1148_v30 }
  0x55   :  { %1031 = vmatpush3.bf16.msra.mxu1 %v1149_v31  ;;  %1038 = vmatprep.subr.bf16.mxu0 %v1154_v38 }
  0x56   :  { %1060 = vmatprep.subr.bf16.mxu1 %v1155_v39 }
  0x57   :  { %651 = vmatmul.mubr.bf16.vlgmr.msra.gmra.mrb[0].mxu0 %v913_v34 }
  0x58   :  { %691 = vmatmul.mubr.bf16.vlgmr.msra.gmra.mrb[0].mxu1 %v915_v36  ;;  %1039 = vmatpush3.bf16.msra.mxu0 %v1156_v40 }
  0x59   :  { %1061 = vmatpush3.bf16.msra.mxu1 %v1157_v41  ;;  %1040 = vmatprep.subr.bf16.mxu0 %v1158_v42 }
  0x5a   :  { %1062 = vmatprep.subr.bf16.mxu1 %v1159_v43  ;;  %730 = vmatprep.mubr.bf16.mxu0 %v918_v8 }
  0x5b   :  { %770 = vmatprep.mubr.bf16.mxu1 %v920_v11 }
  0x5c   :  { %1041 = vmatpush3.bf16.msra.mxu0 %v1160_v44 }
  0x5d   :  { %1063 = vmatpush3.bf16.msra.mxu1 %v1161_v45  ;;  %1042 = vmatprep.subr.bf16.mxu0 %v1162_v46 }
  0x5e   :  { %1064 = vmatprep.subr.bf16.mxu1 %v1163_v47 }
  0x60   :  { %1043 = vmatpush3.bf16.msra.mxu0 %v1164_v48  ;;  %v894_v48 = vlaneseq }
  0x61   :  { %1065 = vmatpush3.bf16.msra.mxu1 %v1165_v49  ;;  %1044 = vmatprep.subr.bf16.mxu0 %v1166_v50  ;;  %v892_v50 = vld [vmem:[%s1377_s5] sm:$0x1] }
  0x62   :  { %1066 = vmatprep.subr.bf16.mxu1 %v1167_v51  ;;  %v895_v49 = vshrl.u32 %v894_v48, 7  ;;  %v893_v51 = vunpack.c.l.bf16 %v892_v50 }
  0x64   :  { %1045 = vmatpush3.bf16.msra.mxu0 %v1168_v52  ;;  %v896_v52 = vsub.s32 0, %v895_v49 }
  0x65   :  { %1067 = vmatpush3.bf16.msra.mxu1 %v1169_v53  ;;  %1046 = vmatprep.subr.bf16.mxu0 %v1170_v54  ;;  %v985_v53 = vld [vmem:[%s1376_s4] ss:$0 sm:$0xff] }
  0x66   :  { %1068 = vmatprep.subr.bf16.mxu1 %v1171_v55 }
  0x68   :  { %1047 = vmatpush3.bf16.msra.mxu0 %v1172_v56 }
  0x69   :  { %1069 = vmatpush3.bf16.msra.mxu1 %v1173_v57  ;;  %1048 = vmatprep.subr.bf16.mxu0 %v1174_v58  ;;  %v897_v57 = vrot.slane %v893_v51, %v896_v52 }
  0x6a   :  { %1070 = vmatprep.subr.bf16.mxu1 %v1175_v59 }
  0x6c   :  { %1049 = vmatpush3.bf16.msra.mxu0 %v1176_v60 }
  0x6d   :  { %1071 = vmatpush3.bf16.msra.mxu1 %v1177_v61  ;;  %1050 = vmatprep.subr.bf16.mxu0 %v1178_v62  ;;  %v902_v62 = vstv %s1378_s6 }
  0x6e   :  { %1072 = vmatprep.subr.bf16.mxu1 %v1179_v63 }
  0x70   :  { %1051 = vmatpush3.bf16.msra.mxu0 %v1180_v0 }
  0x71   :  { %1073 = vmatpush3.bf16.msra.mxu1 %v1181_v1  ;;  %1052 = vmatprep.subr.bf16.mxu0 %v1182_v2 }
  0x72   :  { %1074 = vmatprep.subr.bf16.mxu1 %v1183_v3 }
  0x74   :  { %1053 = vmatpush3.bf16.msra.mxu0 %v1184_v4 }
  0x75   :  { %1075 = vmatpush3.bf16.msra.mxu1 %v1185_v5  ;;  %1091 = vmatprep.subr.bf16.mxu0 %v1273_v13 }
  0x77   :  { %731 = vmatmul.mubr.bf16.vlgmr.msra.gmra.mrb[4].mxu0 %v917_v7 }
  0x78   :  { %771 = vmatmul.mubr.bf16.vlgmr.msra.gmra.mrb[4].mxu1 %v919_v10  ;;  %1092 = vmatpush3.bf16.msra.mxu0 %v1190_v12 }
  0x79   :  { %1093 = vmatprep.subr.bf16.mxu0 %v1273_v13  ;;  %1107 = vmatprep.mubr.msk.bf16.mxu0 %vm1274_vm0, %v1273_v13 }
  0x7c   :  { %1094 = vmatpush3.bf16.msra.mxu0 %v1191_v14 }
  0x7d   :  { %1095 = vmatprep.subr.bf16.mxu0 %v1273_v13 }
  0x80   :  { %1096 = vmatpush3.bf16.msra.mxu0 %v1192_v15 }
  0x81   :  { %1097 = vmatprep.subr.bf16.mxu0 %v1273_v13 }
  0x84   :  { %1098 = vmatpush3.bf16.msra.mxu0 %v1193_v16 }
  0x85   :  { %1099 = vmatprep.subr.bf16.mxu0 %v1273_v13 }
  0x88   :  { %1100 = vmatpush3.bf16.msra.mxu0 %v1194_v17 }
  0x89   :  { %1101 = vmatprep.subr.bf16.mxu0 %v1273_v13 }
  0x8c   :  { %1102 = vmatpush3.bf16.msra.mxu0 %v1195_v18 }
  0x8d   :  { %1103 = vmatprep.subr.bf16.mxu0 %v1273_v13 }
  0x90   :  { %1104 = vmatpush3.bf16.msra.mxu0 %v1196_v19 }
  0x91   :  { %1105 = vmatprep.subr.bf16.mxu0 %v1273_v13 }
  0x94   :  { %1106 = vmatpush3.bf16.msra.mxu0 %v1197_v20 }
 0x12a   :  { %v1010_v21 = vpop.f32.mrb[0].mxu0 }
 0x12b   :  { %v1032_v22 = vpop.f32.mrb[0].mxu1  ;;  %v1011_v24 = vpop.f32.mrb[1].mxu0 }
 0x12c   :  { %v1033_v25 = vpop.f32.mrb[1].mxu1  ;;  %v1012_v26 = vadd.f32 %v1011_v24, %v1010_v21  ;;  %v1013_v28 = vpop.f32.mrb[2].mxu0 }
 0x12d   :  { %v1034_v27 = vadd.f32 %v1033_v25, %v1032_v22  ;;  %v1035_v29 = vpop.f32.mrb[2].mxu1  ;;  %v1014_v30 = vpop.f32.mrb[3].mxu0 }
 0x12e   :  { %v1036_v31 = vpop.f32.mrb[3].mxu1  ;;  %v653_v32 = vadd.f32 %v1012_v26, %v912_v23 }
 0x130   :  { %v693_v33 = vadd.f32 %v1034_v27, %v653_v32 }
 0x14a   :  { %v1054_v34 = vpop.f32.mrb[4].mxu0 }
 0x14b   :  { %v1076_v35 = vpop.f32.mrb[4].mxu1  ;;  %v1055_v36 = vpop.f32.mrb[5].mxu0 }
 0x14c   :  { %v1077_v37 = vpop.f32.mrb[5].mxu1  ;;  %v1056_v38 = vadd.f32 %v1055_v36, %v1054_v34  ;;  %v1057_v40 = vpop.f32.mrb[6].mxu0 }
 0x14d   :  { %v1078_v39 = vadd.f32 %v1077_v37, %v1076_v35  ;;  %v1079_v41 = vpop.f32.mrb[6].mxu1  ;;  %v1058_v42 = vpop.f32.mrb[7].mxu0 }
 0x14e   :  { %v1080_v43 = vpop.f32.mrb[7].mxu1  ;;  %v733_v44 = vadd.f32 %v1056_v38, %v693_v33 }
 0x150   :  { %v773_v45 = vadd.f32 %v1078_v39, %v733_v44 }
 0x152   :  { %v778_v46 = vmax.f32 %v773_v45, 0.0 }
 0x154   :  { %v779_v47 = vpack.c.bf16 %v778_v46, %v778_v46 }
 0x156   :  { %1108 = vmatmul.mubr.bf16.vlgmr.msra.gmra.mrb[8].mxu0 %v779_v47 }
 0x229   :  { %v885_v54 = vpop.f32.mrb[8].mxu0 }
 0x22a   :  { %v886_v55 = vadd.f32 %v985_v53, %v885_v54  ;;  %v1109_v56 = vpop.f32.mrb[9].mxu0 }
 0x22b   :  { %v888_v58 = vpop.f32.mrb[10].mxu0 }
 0x22c   :  { %v891_v59 = vmax.f32 %v886_v55, 0.0  ;;  %v1110_v60 = vpop.f32.mrb[11].mxu0 }
 0x22e   :  { %v898_v61 = vmul.f32 %v897_v57, %v891_v59 }
 0x230   :  { %899 = vadd.xlane.f32.xlu0 %v898_v61 }
 0x2bd   :  { %v900_v63 = vpop.xlane.xlu0 %899 }
 0x2be   :  { %v903_v0 = vadd.f32 %v902_v62, %v900_v63 }
 0x2c0   :  { %905 = vst.msk [vmem:[%s1379_s7] sm:$0xff] %vm904_vm1, %v903_v0 }
 0x2c1   :  { %910 = vsyncpa [#allocation4], 1 }
 0x2c2   :  { %911 = vsyncpa [#allocation6], 1 }

</bundles_post_ra>
